<compile_context>
chip_gen: v7x
topology: tpu7x:2x2x1
jax: 0.10.0
libtpu: 0.0.40
codegen_flags: <defaults>
</compile_context>

<pallas_src>
import math
import functools

import jax
import jax.numpy as jnp
from jax.experimental import pallas as pl
from jax.experimental.pallas import tpu as pltpu

_SQRT_HALF = 1.0 / math.sqrt(2.0)


def _round_up(v, m):
    return ((v + m - 1) // m) * m


def _cdiv(a, b):
    return -(-a // b)


def _mlp_block_kernel(x_ref, w1_ref, b1_ref, w2_ref, b2_ref, o_ref, acc_ref,
                      *, compute_dtype):
    # x_ref:  (tm, C)  input dtype (cast to compute_dtype in-kernel)
    # w1_ref: (C, tH)  compute dtype     b1_ref: (1, tH) f32
    # w2_ref: (tH, C)  compute dtype     b2_ref: (1, C)  f32
    # o_ref:  (tm, C)  output dtype      acc_ref: (tm, C) f32 scratch
    j = pl.program_id(1)

    @pl.when(j == 0)
    def _():
        acc_ref[...] = jnp.zeros_like(acc_ref)

    x = x_ref[...].astype(compute_dtype)

    # Linear 1 (this hidden slice) on the MXU with f32 accumulation.
    h = jnp.dot(x, w1_ref[...], preferred_element_type=jnp.float32)
    h = h + b1_ref[...]

    # Exact (erf-based) GELU in f32 — matches torch.nn.GELU() default.
    h = 0.5 * h * (1.0 + jax.lax.erf(h * _SQRT_HALF))
    # Dropout (eval mode) -> identity.

    # Linear 2 partial sum over this hidden slice, accumulated in f32.
    acc_ref[...] += jnp.dot(h.astype(compute_dtype), w2_ref[...],
                            preferred_element_type=jnp.float32)

    @pl.when(j == pl.num_programs(1) - 1)
    def _():
        # Dropout (eval mode) -> identity.
        o_ref[...] = (acc_ref[...] + b2_ref[...]).astype(o_ref.dtype)


def _tpu_config():
    """Generation-aware tiling / VMEM caps."""
    try:
        kind = jax.devices()[0].device_kind.lower()
    except Exception:
        kind = ""
    if "v7" in kind:
        return dict(tm_cap=256, min_row_steps=2,
                    weight_budget=24 << 20, vmem_cap=56 << 20)
    if "v6" in kind:
        return dict(tm_cap=256, min_row_steps=1,
                    weight_budget=64 << 20, vmem_cap=100 << 20)
    if "v5e" in kind or "v5 lite" in kind or "v5lite" in kind:
        return dict(tm_cap=512, min_row_steps=1,
                    weight_budget=64 << 20, vmem_cap=100 << 20)
    # Unknown generation: conservative (v7x-like, 64 MiB physical VMEM).
    return dict(tm_cap=256, min_row_steps=2,
                weight_budget=24 << 20, vmem_cap=56 << 20)


def _choose_tm(M, cap, min_row_steps):
    Mp = _round_up(M, 8)
    tm = min(cap, Mp)
    if min_row_steps > 1 and Mp > 8:
        # Guarantee >= min_row_steps steps on the "parallel" row axis so it can
        # shard across v7x's 2 TensorCores.
        tm = min(tm, max(8, _round_up(_cdiv(Mp, min_row_steps), 8)))
    return tm


def _choose_th(C, H, cd_bytes, weight_budget):
    # Keep full weights resident (single-buffered) if they fit the budget, or
    # if H can't be split into 128-multiples.
    if 2 * C * H * cd_bytes <= weight_budget or H % 128 != 0:
        return H
    # When tiling, weight slices are double-buffered while streaming, so the
    # per-step weight footprint is ~ 4 * C * tH * cd_bytes.
    max_th = max(128, (weight_budget // (4 * C * cd_bytes)) // 128 * 128)
    best = 128
    d = 128
    while d <= min(H, max_th):
        if H % d == 0:
            best = d
        d += 128
    return best


@functools.partial(jax.jit, static_argnames=("compute_dtype", "tm", "th"))
def mlp_block(x, w1, b1, w2, b2, *, compute_dtype=jnp.bfloat16, tm=None, th=None):
    """Fused Linear->GELU->Dropout(eval)->Linear->Dropout(eval).

    x: [..., C]; w1: [C, H]; b1: [H]; w2: [H, C]; b2: [C].
    NOTE: matmuls run in `compute_dtype` (bf16 by default, a numerics change vs
    an f32 torch MLPBlock) with f32 accumulation; use compute_dtype=jnp.float32
    for exact f32.
    """
    orig_shape = x.shape
    C = orig_shape[-1]
    H = w1.shape[1]
    out_dtype = x.dtype

    x2d = x.reshape(-1, C)
    M = x2d.shape[0]

    cfg = _tpu_config()
    cd_bytes = jnp.dtype(compute_dtype).itemsize

    if tm is None:
        tm = _choose_tm(M, cfg["tm_cap"], cfg["min_row_steps"])
    if th is None:
        th = _choose_th(C, H, cd_bytes, cfg["weight_budget"])
    nm = _cdiv(M, tm)   # partial last row tile handled by Pallas (no jnp.pad copy)
    nh = _cdiv(H, th)

    # Cast weights only when needed (pre-cast bf16 weights outside the hot path
    # make this a no-op); x stays in its native dtype and is cast in-kernel.
    w1c = w1 if w1.dtype == compute_dtype else w1.astype(compute_dtype)
    w2c = w2 if w2.dtype == compute_dtype else w2.astype(compute_dtype)
    b1_2d = b1.reshape(1, H).astype(jnp.float32)
    b2_2d = b2.reshape(1, C).astype(jnp.float32)

    # Resident (constant-index) operands single-buffered; streamed hidden
    # slices keep the default double buffer.
    resident = pl.Buffered(1)
    if nh == 1:
        w1_spec = pl.BlockSpec((C, th), lambda i, j: (0, 0), pipeline_mode=resident)
        b1_spec = pl.BlockSpec((1, th), lambda i, j: (0, 0), pipeline_mode=resident)
        w2_spec = pl.BlockSpec((th, C), lambda i, j: (0, 0), pipeline_mode=resident)
    else:
        w1_spec = pl.BlockSpec((C, th), lambda i, j: (0, j))
        b1_spec = pl.BlockSpec((1, th), lambda i, j: (0, j))
        w2_spec = pl.BlockSpec((th, C), lambda i, j: (j, 0))
    b2_spec = pl.BlockSpec((1, C), lambda i, j: (0, 0), pipeline_mode=resident)

    x_bytes = jnp.dtype(x.dtype).itemsize
    out_bytes = jnp.dtype(out_dtype).itemsize
    wbuf = 1 if nh == 1 else 2
    footprint = (2 * tm * C * x_bytes                    # x tiles (double buffered)
                 + 2 * tm * C * out_bytes                # out tiles
                 + wbuf * (C * th + th * C) * cd_bytes   # w1/w2 blocks
                 + wbuf * th * 4 + C * 4                 # biases (f32)
                 + tm * C * 4)                           # f32 accumulator scratch
    vmem_limit = min(cfg["vmem_cap"], max(32 << 20, int(footprint * 1.25) + (8 << 20)))

    weight_bytes = (C * H + H * C) * cd_bytes + (H + C) * 4
    cost = pl.CostEstimate(
        flops=4 * M * C * H,                             # two matmuls, 2 flop/MAC
        transcendentals=M * H,                           # erf over hidden activations
        bytes_accessed=(M * C * x_bytes
                        + weight_bytes * (1 if nh == 1 else nm)
                        + M * C * out_bytes),
    )

    out2d = pl.pallas_call(
        functools.partial(_mlp_block_kernel, compute_dtype=compute_dtype),
        out_shape=jax.ShapeDtypeStruct((M, C), out_dtype),
        grid_spec=pltpu.PrefetchScalarGridSpec(
            num_scalar_prefetch=0,
            grid=(nm, nh),                               # hidden (reduction) axis innermost
            in_specs=[
                pl.BlockSpec((tm, C), lambda i, j: (i, 0)),   # x row tile (resident over j)
                w1_spec, b1_spec, w2_spec, b2_spec,
            ],
            out_specs=pl.BlockSpec((tm, C), lambda i, j: (i, 0)),
            scratch_shapes=[pltpu.VMEM((tm, C), jnp.float32)],
        ),
        compiler_params=pltpu.CompilerParams(
            dimension_semantics=("parallel", "arbitrary"),
            vmem_limit_bytes=vmem_limit,
        ),
        cost_estimate=cost,
    )(x2d, w1c, b1_2d, w2c, b2_2d)

    return out2d.reshape(orig_shape)


def reference_mlp_block(x, w1, b1, w2, b2):
    h = x @ w1 + b1
    h = jax.nn.gelu(h, approximate=False)
    return h @ w2 + b2


if __name__ == "__main__":
    # MLP-Mixer-style channel-mixing MLP: batch=2, seq=8, in=128, hidden=256.
    batch, seq = 2, 8
    in_channels, hidden_channels = 128, 256

    key = jax.random.PRNGKey(0)
    kx, kw1, kb1, kw2, kb2 = jax.random.split(key, 5)

    x = jax.random.normal(kx, (batch, seq, in_channels), dtype=jnp.float32)

    # Deterministic parameter init (uniform, like torch Linear's default range).
    bound1 = 1.0 / math.sqrt(in_channels)
    w1 = jax.random.uniform(kw1, (in_channels, hidden_channels),
                            minval=-bound1, maxval=bound1, dtype=jnp.float32)
    b1 = jax.random.uniform(kb1, (hidden_channels,),
                            minval=-bound1, maxval=bound1, dtype=jnp.float32)
    bound2 = 1.0 / math.sqrt(hidden_channels)
    w2 = jax.random.uniform(kw2, (hidden_channels, in_channels),
                            minval=-bound2, maxval=bound2, dtype=jnp.float32)
    b2 = jax.random.uniform(kb2, (in_channels,),
                            minval=-bound2, maxval=bound2, dtype=jnp.float32)

    ref = reference_mlp_block(x.reshape(-1, in_channels), w1, b1, w2, b2)
    ref = ref.reshape(batch, seq, in_channels)

    # f32 compute path: close to the reference.
    out_f32 = mlp_block(x, w1, b1, w2, b2, compute_dtype=jnp.float32)
    jax.block_until_ready(out_f32)
    assert jnp.allclose(out_f32, ref, atol=1e-4, rtol=1e-4), "f32 mismatch vs reference"

    # bf16 fast path: weights pre-cast ONCE outside the per-call hot path.
    w1_bf16 = w1.astype(jnp.bfloat16)
    w2_bf16 = w2.astype(jnp.bfloat16)
    out_bf16 = mlp_block(x, w1_bf16, b1, w2_bf16, b2)   # compute_dtype=bf16 default
    jax.block_until_ready(out_bf16)
    assert jnp.allclose(out_bf16, ref, atol=3e-2, rtol=3e-2), "bf16 mismatch vs reference"

    print("KERNEL_OK")
</pallas_src>

<mosaic_0001>
module attributes {stable_mosaic.version = 11 : i64} {
  func.func @_mlp_block_kernel(%arg0: i32, %arg1: i32, %arg2: memref<8x128xf32, #tpu.memory_space<vmem>>, %arg3: memref<128x256xf32, #tpu.memory_space<vmem>>, %arg4: memref<1x256xf32, #tpu.memory_space<vmem>>, %arg5: memref<256x128xf32, #tpu.memory_space<vmem>>, %arg6: memref<1x128xf32, #tpu.memory_space<vmem>>, %arg7: memref<8x128xf32, #tpu.memory_space<vmem>>, %arg8: memref<8x128xf32, #tpu.memory_space<vmem>>) attributes {dimension_semantics = [#tpu.dimension_semantics<parallel>, #tpu.dimension_semantics<arbitrary>], iteration_bounds = array<i64: 2, 1>, scalar_prefetch = 0 : i64, scratch_operands = 1 : i64, tpu.core_type = #tpu.core_type<tc>, window_params = [{transform_indices = @transform_0, window_bounds = array<i64: 8, 128>}, {pipeline_mode = #tpu.pipeline_mode<synchronous>, transform_indices = @transform_1, window_bounds = array<i64: 128, 256>}, {pipeline_mode = #tpu.pipeline_mode<synchronous>, transform_indices = @transform_2, window_bounds = array<i64: 1, 256>}, {pipeline_mode = #tpu.pipeline_mode<synchronous>, transform_indices = @transform_3, window_bounds = array<i64: 256, 128>}, {pipeline_mode = #tpu.pipeline_mode<synchronous>, transform_indices = @transform_4, window_bounds = array<i64: 1, 128>}, {transform_indices = @transform_5, window_bounds = array<i64: 8, 128>}]} {
    %c0_i32 = arith.constant 0 : i32
    %0 = arith.cmpi eq, %arg1, %c0_i32 : i32
    %1 = arith.extui %0 : i1 to i32
    %c0_i32_0 = arith.constant 0 : i32
    %2 = arith.cmpi ne, %1, %c0_i32_0 : i32
    scf.if %2 {
      %cst_18 = arith.constant 0.000000e+00 : f32
      %25 = vector.broadcast %cst_18 : f32 to vector<8x128xf32>
      %c0_19 = arith.constant 0 : index
      %c0_20 = arith.constant 0 : index
      %26 = vector.load %arg8[%c0_19, %c0_20] : memref<8x128xf32, #tpu.memory_space<vmem>>, vector<8x128xf32>
      tpu.vector_store %arg8[%c0_19, %c0_20], %25 {strides = array<i32>} : memref<8x128xf32, #tpu.memory_space<vmem>>, vector<8x128xf32>,
    } else {
    }
    %c0 = arith.constant 0 : index
    %c0_1 = arith.constant 0 : index
    %3 = vector.load %arg2[%c0, %c0_1] : memref<8x128xf32, #tpu.memory_space<vmem>>, vector<8x128xf32>
    %c0_2 = arith.constant 0 : index
    %c0_3 = arith.constant 0 : index
    %4 = vector.load %arg3[%c0_2, %c0_3] : memref<128x256xf32, #tpu.memory_space<vmem>>, vector<128x256xf32>
    %cst = arith.constant dense<0.000000e+00> : vector<8x256xf32>
    %5 = tpu.matmul %3, %4, %cst {dimension_numbers = #tpu.dot_dimension_numbers<[1], [0], [0], [1], [0, 0, 1, 1], [], []>} : vector<8x128xf32>, vector<128x256xf32>, vector<8x256xf32> -> vector<8x256xf32>
    %c0_4 = arith.constant 0 : index
    %c0_5 = arith.constant 0 : index
    %6 = vector.load %arg4[%c0_4, %c0_5] : memref<1x256xf32, #tpu.memory_space<vmem>>, vector<1x256xf32>
    %7 = vector.broadcast %6 : vector<1x256xf32> to vector<8x256xf32>
    %8 = arith.addf %5, %7 : vector<8x256xf32>
    %cst_6 = arith.constant 5.000000e-01 : f32
    %9 = vector.broadcast %cst_6 : f32 to vector<8x256xf32>
    %10 = arith.mulf %9, %8 : vector<8x256xf32>
    %cst_7 = arith.constant 0.707106769 : f32
    %11 = vector.broadcast %cst_7 : f32 to vector<8x256xf32>
    %12 = arith.mulf %8, %11 : vector<8x256xf32>
    %13 = math.erf %12 : vector<8x256xf32>
    %cst_8 = arith.constant 1.000000e+00 : f32
    %14 = vector.broadcast %cst_8 : f32 to vector<8x256xf32>
    %15 = arith.addf %14, %13 : vector<8x256xf32>
    %16 = arith.mulf %10, %15 : vector<8x256xf32>
    %c0_9 = arith.constant 0 : index
    %c0_10 = arith.constant 0 : index
    %17 = vector.load %arg8[%c0_9, %c0_10] : memref<8x128xf32, #tpu.memory_space<vmem>>, vector<8x128xf32>
    %c0_11 = arith.constant 0 : index
    %c0_12 = arith.constant 0 : index
    %18 = vector.load %arg5[%c0_11, %c0_12] : memref<256x128xf32, #tpu.memory_space<vmem>>, vector<256x128xf32>
    %cst_13 = arith.constant dense<0.000000e+00> : vector<8x128xf32>
    %19 = tpu.matmul %16, %18, %cst_13 {dimension_numbers = #tpu.dot_dimension_numbers<[1], [0], [0], [1], [0, 0, 1, 1], [], []>} : vector<8x256xf32>, vector<256x128xf32>, vector<8x128xf32> -> vector<8x128xf32>
    %20 = arith.addf %17, %19 : vector<8x128xf32>
    %c0_14 = arith.constant 0 : index
    %c0_15 = arith.constant 0 : index
    %21 = vector.load %arg8[%c0_14, %c0_15] : memref<8x128xf32, #tpu.memory_space<vmem>>, vector<8x128xf32>
    tpu.vector_store %arg8[%c0_14, %c0_15], %20 {strides = array<i32>} : memref<8x128xf32, #tpu.memory_space<vmem>>, vector<8x128xf32>,
    %c0_i32_16 = arith.constant 0 : i32
    %22 = arith.cmpi eq, %arg1, %c0_i32_16 : i32
    %23 = arith.extui %22 : i1 to i32
    %c0_i32_17 = arith.constant 0 : i32
    %24 = arith.cmpi ne, %23, %c0_i32_17 : i32
    scf.if %24 {
      %c0_18 = arith.constant 0 : index
      %c0_19 = arith.constant 0 : index
      %25 = vector.load %arg8[%c0_18, %c0_19] : memref<8x128xf32, #tpu.memory_space<vmem>>, vector<8x128xf32>
      %c0_20 = arith.constant 0 : index
      %c0_21 = arith.constant 0 : index
      %26 = vector.load %arg6[%c0_20, %c0_21] : memref<1x128xf32, #tpu.memory_space<vmem>>, vector<1x128xf32>
      %27 = vector.broadcast %26 : vector<1x128xf32> to vector<8x128xf32>
      %28 = arith.addf %25, %27 : vector<8x128xf32>
      %c0_22 = arith.constant 0 : index
      %c0_23 = arith.constant 0 : index
      %29 = vector.load %arg7[%c0_22, %c0_23] : memref<8x128xf32, #tpu.memory_space<vmem>>, vector<8x128xf32>
      tpu.vector_store %arg7[%c0_22, %c0_23], %28 {strides = array<i32>} : memref<8x128xf32, #tpu.memory_space<vmem>>, vector<8x128xf32>,
    } else {
    }
    return
  }
  func.func @transform_0(%arg0: i32, %arg1: i32) -> (i32, i32) {
    %c0_i32 = arith.constant 0 : i32
    %c0_i32_0 = arith.constant 0 : i32
    return %arg0, %c0_i32 : i32, i32
  }
  func.func @transform_1(%arg0: i32, %arg1: i32) -> (i32, i32) {
    %c0_i32 = arith.constant 0 : i32
    %c0_i32_0 = arith.constant 0 : i32
    %c0_i32_1 = arith.constant 0 : i32
    return %c0_i32, %c0_i32_0 : i32, i32
  }
  func.func @transform_2(%arg0: i32, %arg1: i32) -> (i32, i32) {
    %c0_i32 = arith.constant 0 : i32
    %c0_i32_0 = arith.constant 0 : i32
    %c0_i32_1 = arith.constant 0 : i32
    return %c0_i32, %c0_i32_0 : i32, i32
  }
  func.func @transform_3(%arg0: i32, %arg1: i32) -> (i32, i32) {
    %c0_i32 = arith.constant 0 : i32
    %c0_i32_0 = arith.constant 0 : i32
    %c0_i32_1 = arith.constant 0 : i32
    return %c0_i32, %c0_i32_0 : i32, i32
  }
  func.func @transform_4(%arg0: i32, %arg1: i32) -> (i32, i32) {
    %c0_i32 = arith.constant 0 : i32
    %c0_i32_0 = arith.constant 0 : i32
    %c0_i32_1 = arith.constant 0 : i32
    return %c0_i32, %c0_i32_0 : i32, i32
  }
  func.func @transform_5(%arg0: i32, %arg1: i32) -> (i32, i32) {
    %c0_i32 = arith.constant 0 : i32
    %c0_i32_0 = arith.constant 0 : i32
    return %arg0, %c0_i32 : i32, i32
  }
}

</mosaic_0001>

<bundles_post_ra>
// kernel: mlp_block.1
= control target key start
LH: loop header
LB: loop body
LE: loop exit
PB: predicated region body
PF: predicated region fallthrough
CT: control target
= control target key end

     0   :  { %10 = vsyncpa [#allocation4], 0  ;;  %s1326_s0 = inlined_call_operand.hbm [shape: f32[16,128], index: 0, kind: input, shape index: {}]   ;;  %s1327_s1 = inlined_call_operand.hbm [shape: f32[128,256], index: 1, kind: input, shape index: {}]   ;;  %s1328_s2 = inlined_call_operand.vmem [shape: f32[1,256], index: 2, kind: input, shape index: {}]   ;;  %s1329_s3 = inlined_call_operand.hbm [shape: f32[256,128], index: 3, kind: input, shape index: {}]   ;;  %s1330_s4 = inlined_call_operand.vmem [shape: f32[1,128], index: 4, kind: input, shape index: {}]   ;;  %s1331_s5 = inlined_call_operand.hbm [shape: f32[16,128], index: 5, kind: output, shape index: {}]  }
   0x1   :  { %12 = vsyncpa [#allocation4 + $0x1], 0 }
   0x2   :  { %13 = vsyncpa [#allocation7], 0 }
   0x3   :  { %14 = vsyncpa [#allocation5], 0 }
   0x4   :  { %16 = vsyncpa [#allocation5 + $0x1], 0  ;;  %s1063_s18 = smov 0   ;;  %s1065_s19 = smov 0  }
   0x5   :  { %s1067_s20 = smov 0   ;;  %s1069_s21 = smov 0  }
   0x6   :  { %s1071_s22 = smov 0   ;;  %s1073_s23 = smov 0  }
   0x7 LB: > { %s641_s24 = sadd.s32 4294967295, %s1022_s23   ;;  %s642_s25 = sadd.s32 4294967294, %s1022_s23   ;;  %s1022_s23 = sphi %s1073_s23, %s22_s23   ;;  %s1018_s22 = sphi %s1071_s22, %s1353_s22   ;;  %s1014_s21 = sphi %s1069_s21, %s1352_s21   ;;  %s1010_s20 = sphi %s1067_s20, %s1351_s20   ;;  %s1006_s19 = sphi %s1065_s19, %s1350_s19   ;;  %s1002_s18 = sphi %s1063_s18, %s1349_s18  }
   0x8   : > { %p54_p0 = scmp.ne.s32.totalorder %s1006_s19, %s1002_s18  ;;  %p1097_p1 = scmp.eq.s32.totalorder %s641_s24, 0 }
   0x9   : > { %p1101_p2 = scmp.eq.s32.totalorder %s641_s24, 1  ;;  %p168_p3 = scmp.eq.s32.totalorder %s642_s25, 1 }
   0xa   : > { %s1336_s26 = scalar_select %p1097_p1, 1, 0 }
   0xb   : > { %p1107_p4 = por %p1097_p1, %p54_p0  ;;  %p643_p5 = scmp.ge.s32.totalorder %s1022_s23, 1 }
   0xc   : > { %p1112_p6 = por %p168_p3, %p54_p0  ;;  %p175_p7 = scmp.lt.s32.totalorder %s1022_s23, 3 }
   0xd   : > { %s1338_s28 = scalar_select %p1107_p4, 1, 0 }
   0xe   : > { %s1339_s29 = scalar_select %p1112_p6, 1, 0 }
   0xf   : > { %p1117_p8 = pnand %p643_p5, %p175_p7  ;;  %s1024_s6 = smov [#allocation6]  }
  0x10   : > { %s187_s7 = sshll.u32 %s1024_s6, 4  ;;  %s1025_s9 = smov [#allocation8]   ;;  %s1121_s7 = int_to_ptr.vmem [resolvable:$true] %s187_s7 }
  0x11   : > { %p770_p9 = pneg %p1117_p8  ;;  %s203_s10 = sshll.u32 %s1025_s9, 4  ;;  %s1132_s10 = int_to_ptr.vmem [resolvable:$true] %s203_s10 }
  0x12   : > { %s850_s13 = scalar_lea.hbm %s1327_s1, 4096 }
  0x13   : > { %p1128_p11 = pnand %p770_p9, %p1097_p1  ;;  %p851_p12 = scmp.ne.s32.totalorder %s1327_s1, %s850_s13 }
  0x14   : > { %p857_p5 = scmp.lt.u32.totalorder %s850_s13, %s1327_s1 }
  0x15   : > { %p852_p13 = pneg %p1128_p11 }
  0x17   : > { %p853_p0 = pnand %p852_p13, %p851_p12 }
  0x19   : > { %p854_p3 = pneg %p853_p0 }
  0x1b   : > { %p859_p7 = pnand %p857_p5, %p854_p3 }
  0x1d   : > { %862 = shalt.err (!%p859_p7)
}
  0x1e   : > { %s863_s24 = scalar_lea.vmem %s1121_s7, 4096  ;;  %p871_p1 = scmp.lt.s32.totalorder %s1121_s7, %s1121_s7 }
  0x1f   : > { %p864_p9 = scmp.ne.s32.totalorder %s1121_s7, %s863_s24  ;;  %p872_p12 = scmp.lt.s32.totalorder %s863_s24, %s863_s24 }
  0x21   : > { %p866_p10 = pnand %p864_p9, %p852_p13  ;;  %p873_p0 = por %p872_p12, %p871_p1 }
  0x23   : > { %p867_p6 = pneg %p866_p10 }
  0x25   : > { %p874_p4 = pnand %p873_p0, %p867_p6 }
  0x27   : > { %877 = shalt.err (!%p874_p4)
}
  0x28   : > { %s1026_s25 = smov 256   ;;  %s1027_s6 = smov 16  }
  0x29   : > { %773 = dma.hbm_to_vmem [thread:$0]  (!%p1128_p11), %s1327_s1, 4096, %s1121_s7, [#allocation7], %s1026_s25, %s1026_s25, %s1027_s6  }
  0x2a   : > { %s878_s14 = scalar_lea.hbm %s1329_s3, 4096 }
  0x2b   : > { %p879_p1 = scmp.ne.s32.totalorder %s1329_s3, %s878_s14  ;;  %p885_p10 = scmp.lt.u32.totalorder %s878_s14, %s1329_s3 }
  0x2d   : > { %p881_p4 = pnand %p879_p1, %p852_p13 }
  0x2f   : > { %p882_p6 = pneg %p881_p4 }
  0x31   : > { %p887_p3 = pnand %p885_p10, %p882_p6 }
  0x33   : > { %890 = shalt.err (!%p887_p3)
}
  0x34   : > { %s891_s7 = scalar_lea.vmem %s1132_s10, 4096  ;;  %p899_p12 = scmp.lt.s32.totalorder %s1132_s10, %s1132_s10 }
  0x35   : > { %p892_p5 = scmp.ne.s32.totalorder %s1132_s10, %s891_s7  ;;  %p900_p0 = scmp.lt.s32.totalorder %s891_s7, %s891_s7 }
  0x37   : > { %p894_p7 = pnand %p892_p5, %p852_p13  ;;  %p901_p1 = por %p900_p0, %p899_p12 }
  0x39   : > { %p895_p9 = pneg %p894_p7 }
  0x3b   : > { %p902_p4 = pnand %p901_p1, %p895_p9 }
  0x3d   : > { %905 = shalt.err (!%p902_p4)
}
  0x3e   : > { %s1028_s25 = smov 128   ;;  %s1029_s6 = smov 8  }
  0x3f   : > { %776 = dma.hbm_to_vmem [thread:$0]  (!%p1128_p11), %s1329_s3, 4096, %s1132_s10, [#allocation7], %s1028_s25, %s1028_s25, %s1029_s6  }
  0x40   : > { %s34_s12 = sadd.s32 1, %s1018_s22  ;;  %s41_s13 = sadd.s32 1, %s1010_s20 }
  0x41   : > { %p36_p13 = scmp.ge.s32.totalorder %s34_s12, 2  ;;  %p48_p6 = scmp.ne.s32.totalorder %s1010_s20, %s1006_s19 }
  0x42   : > { %p49_p10 = scmp.eq.s32.totalorder %s1022_s23, 0  ;;  %p787_p3 = scmp.lt.s32.totalorder %s1022_s23, 2 }
  0x43   : > { %s1355_s12 = smov (%p36_p13, %s34_s12), 0  ;;  %p1196_p7 = por %p1101_p2, %p48_p6 }
  0x44   : > { %p50_p5 = por %p49_p10, %p48_p6  ;;  %s38_s8 = ssub.s32 %s1018_s22, %s1355_s12 }
  0x45   : > { %s1342_s14 = scalar_select %p1196_p7, 1, 0 }
  0x46   : > { %s220_s15 = sand.u32 1, %s1010_s20   ;;  %p39_p9 = scmp.eq.s32.totalorder %s38_s8, 0 }
  0x47   : > { %s647_s10 = sshll.u32 %s220_s15, 3  ;;  %s648_s16 = sshll.u32 %s1018_s22, 7 }
  0x48   : > { %s1205_s17 = scalar_select %p39_p9, %s1010_s20, %s41_s13  }
  0x49   : > { %s1210_s25 = scalar_lea.hbm %s1326_s0, %s648_s16  ;;  %s224_s27 = scalar_lea.vmem [#allocation3], %s647_s10 }
  0x4a   : > { %s231_s6 = sshll.u32 %s224_s27, 4  ;;  %p1214_p2 = pnand %p787_p3, %p50_p5  ;;  %s1218_s6 = int_to_ptr.vmem [resolvable:$true] %s231_s6 }
  0x4b   : > { %s221_s11 = scalar_lea.sflag [#allocation4], %s220_s15  ;;  %s906_s13 = scalar_lea.hbm %s1210_s25, 128 }
  0x4c   : > { %p907_p11 = scmp.ne.s32.totalorder %s1210_s25, %s906_s13  ;;  %p908_p12 = pneg %p1214_p2 }
  0x4d   : > { %s911_s16 = scalar_lea.hbm %s1326_s0, 256  ;;  %p912_p4 = scmp.lt.u32.totalorder %s1210_s25, %s1326_s0 }
  0x4e   : > { %p909_p0 = pnand %p908_p12, %p907_p11  ;;  %p913_p13 = scmp.lt.u32.totalorder %s911_s16, %s906_s13 }
  0x4f   : > { %p915_p10 = scmp.lt.u32.totalorder %s906_s13, %s1210_s25 }
  0x50   : > { %p910_p1 = pneg %p909_p0  ;;  %p914_p6 = por %p913_p13, %p912_p4 }
  0x52   : > { %p916_p3 = por %p915_p10, %p914_p6 }
  0x54   : > { %p917_p5 = pnand %p916_p3, %p910_p1 }
  0x56   : > { %920 = shalt.err (!%p917_p5)
}
  0x57   : > { %s921_s15 = scalar_lea.vmem %s1218_s6, 128  ;;  %s1030_s27 = smov [#allocation3]  }
  0x58   : > { %p922_p9 = scmp.ne.s32.totalorder %s1218_s6, %s921_s15  ;;  %s926_s8 = sshll.u32 %s1030_s27, 4  ;;  %s927_s8 = int_to_ptr.vmem [resolvable:$false] %s926_s8 }
  0x59   : > { %s928_s10 = scalar_lea.vmem %s927_s8, 256  ;;  %p929_p7 = scmp.lt.s32.totalorder %s1218_s6, %s927_s8 }
  0x5a   : > { %p924_p11 = pnand %p922_p9, %p908_p12  ;;  %p930_p4 = scmp.lt.s32.totalorder %s928_s10, %s921_s15 }
  0x5c   : > { %p925_p0 = pneg %p924_p11  ;;  %p931_p13 = por %p930_p4, %p929_p7 }
  0x5e   : > { %p932_p6 = pnand %p931_p13, %p925_p0 }
  0x60   : > { %935 = shalt.err (!%p932_p6)
}
  0x61   : > { %780 = dma.hbm_to_vmem [thread:$0]  (!%p1214_p2), %s1210_s25, 128, %s1218_s6, %s221_s11  }
  0x62   : > { %240 = sbr.rel (%p1117_p8) target bundleno = 608 (0x260), region = 40  ;;  %s1248_s13 = sand.u32 (!%p1117_p8), 1, %s1006_s19  }
  0x63   : > { %s650_s16 = sshll.u32 (!%p1117_p8), %s1248_s13, 3  ;;  %s243_s24 = scalar_lea.sflag (!%p1117_p8), [#allocation4], %s1248_s13 }
  0x64   : > { %s1254_s7 = scalar_lea.vmem (!%p1117_p8), [#allocation3], %s650_s16  ;;  %p1344_p7 = scmp.ne.s32.totalorder (!%p1117_p8), %s1338_s28, 0 }
  0x69   : > { %989 = dma.done.wait (%p1344_p7), %s243_s24, 128  }
  0x6a   : > { %991 = vsyncadd (%p1344_p7), %s243_s24, 4294967168  ;;  %p1345_p2 = scmp.ne.s32.totalorder %s1336_s26, 0 }
  0x6c   : > { %993 = dma.done.wait (%p1345_p2), [#allocation7], 8192  }
  0x6d   : > { %995 = vsyncadd (%p1345_p2), [#allocation7], 4294959104  ;;  %v1031_v0 = vmov 0.0   ;;  %v288_v1 = vld [vmem:[#allocation6 + $0x8] sm:$0xff]  ;;  %v290_v2 = vld [vmem:[#allocation6 + $0x18] sm:$0xff]  ;;  %s656_s6 = sshll.u32 %s1014_s21, 7 }
  0x6e   : > { %395 = vmatprep.mubr.f32.mxu0 %v1031_v0  ;;  %v287_v3 = vld [vmem:[#allocation6] sm:$0xff]  ;;  %v694_v4 = vpack.c.bf16 %v290_v2, %v288_v1  ;;  %v289_v5 = vld [vmem:[#allocation6 + $0x10] sm:$0xff]  ;;  %v292_v6 = vld [vmem:[#allocation6 + $0x28] sm:$0xff]  ;;  %s280_s9 = scalar_lea.vmem [#allocation9], %s650_s16  ;;  %s1277_s8 = scalar_lea.hbm %s1331_s5, %s656_s6 }
  0x6f   : > { %v294_v7 = vld [vmem:[#allocation6 + $0x38] sm:$0xff]  ;;  %v696_v8 = vpack.c.bf16 %v289_v5, %v287_v3  ;;  %v291_v10 = vld [vmem:[#allocation6 + $0x20] sm:$0xff]  ;;  %v293_v11 = vld [vmem:[#allocation6 + $0x30] sm:$0xff]  ;;  %s544_s11 = sshll.u32 %s280_s9, 4  ;;  %s531_s10 = scalar_lea.sflag [#allocation5], %s1248_s13  ;;  %s1279_s11 = int_to_ptr.vmem [resolvable:$true] %s544_s11 }
  0x70   : > { %v698_v9 = vpack.c.bf16 %v294_v7, %v292_v6  ;;  %v296_v12 = vld [vmem:[#allocation6 + $0x48] sm:$0xff]  ;;  %695 = vmatprep.subr.bf16.mxu0 %v694_v4  ;;  %v298_v13 = vld [vmem:[#allocation6 + $0x58] sm:$0xff]  ;;  %v700_v14 = vpack.c.bf16 %v293_v11, %v291_v10  ;;  %v295_v16 = vld [vmem:[#allocation6 + $0x40] sm:$0xff]  ;;  %s936_s24 = scalar_lea.vmem %s1279_s11, 128  ;;  %p1346_p12 = scmp.ne.s32.totalorder %s1342_s14, 0 }
  0x71   : > { %697 = vmatpush1.bf16.msra.mxu0 %v696_v8  ;;  %v702_v15 = vpack.c.bf16 %v298_v13, %v296_v12  ;;  %v297_v17 = vld [vmem:[#allocation6 + $0x50] sm:$0xff]  ;;  %v300_v18 = vld [vmem:[#allocation6 + $0x68] sm:$0xff]  ;;  %v302_v19 = vld [vmem:[#allocation6 + $0x78] sm:$0xff]  ;;  %p937_p8 = scmp.ne.s32.totalorder %s1279_s11, %s936_s24  ;;  %s1032_s21 = smov [#allocation9]  }
  0x72   : > { %699 = vmatprep.subr.bf16.mxu0 %v698_v9  ;;  %v704_v20 = vpack.c.bf16 %v297_v17, %v295_v16  ;;  %v706_v21 = vpack.c.bf16 %v302_v19, %v300_v18  ;;  %v299_v22 = vld [vmem:[#allocation6 + $0x60] sm:$0xff]  ;;  %v301_v23 = vld [vmem:[#allocation6 + $0x70] sm:$0xff]  ;;  %v304_v24 = vld [vmem:[#allocation6 + $0x88] sm:$0xff]  ;;  %s940_s16 = sshll.u32 %s1032_s21, 4  ;;  %s941_s16 = int_to_ptr.vmem [resolvable:$false] %s940_s16 }
  0x73   : > { %v306_v25 = vld [vmem:[#allocation6 + $0x98] sm:$0xff]  ;;  %v303_v26 = vld [vmem:[#allocation6 + $0x80] sm:$0xff]  ;;  %v305_v27 = vld [vmem:[#allocation6 + $0x90] sm:$0xff]  ;;  %v708_v31 = vpack.c.bf16 %v301_v23, %v299_v22  ;;  %p938_p1 = pnand %p937_p8, %p1346_p12  ;;  %p943_p3 = scmp.lt.s32.totalorder %s1279_s11, %s941_s16 }
  0x74   : > { %v429_v28 = vld [vmem:[#allocation8 + $0x80] sm:$0xff]  ;;  %v430_v29 = vld [vmem:[#allocation8 + $0x88] sm:$0xff]  ;;  %v431_v34 = vld [vmem:[#allocation8 + $0x90] sm:$0xff]  ;;  %v710_v36 = vpack.c.bf16 %v306_v25, %v304_v24  ;;  %v712_v46 = vpack.c.bf16 %v305_v27, %v303_v26 }
  0x75   : > { %701 = vmatpush1.bf16.msra.mxu0 %v700_v14  ;;  %v413_v30 = vld [vmem:[#allocation8] sm:$0xff]  ;;  %v726_v32 = vpack.c.bf16 %v430_v29, %v429_v28  ;;  %v414_v33 = vld [vmem:[#allocation8 + $0x8] sm:$0xff]  ;;  %v432_v35 = vld [vmem:[#allocation8 + $0x98] sm:$0xff]  ;;  %p939_p10 = pneg %p938_p1 }
  0x76   : > { %703 = vmatprep.subr.bf16.mxu0 %v702_v15  ;;  %v728_v37 = vpack.c.bf16 %v414_v33, %v413_v30  ;;  %v730_v38 = vpack.c.bf16 %v432_v35, %v431_v34  ;;  %v415_v39 = vld [vmem:[#allocation8 + $0x10] sm:$0xff]  ;;  %v416_v40 = vld [vmem:[#allocation8 + $0x18] sm:$0xff]  ;;  %v433_v41 = vld [vmem:[#allocation8 + $0xa0] sm:$0xff]  ;;  %v321_v34 = vlaneseq }
  0x77   : > { %v308_v42 = vld [vmem:[#allocation6 + $0xa8] sm:$0xff]  ;;  %v310_v43 = vld [vmem:[#allocation6 + $0xb8] sm:$0xff]  ;;  %727 = vmatprep.subr.bf16.mxu1 %v726_v32  ;;  %v732_v45 = vpack.c.bf16 %v416_v40, %v415_v39  ;;  %v417_v48 = vld [vmem:[#allocation8 + $0x20] sm:$0xff] }
  0x78   : > { %v434_v44 = vld [vmem:[#allocation8 + $0xa8] sm:$0xff]  ;;  %729 = vmatpush3.bf16.msra.mxu1 %v728_v37  ;;  %v714_v50 = vpack.c.bf16 %v310_v43, %v308_v42  ;;  %v307_v51 = vld [vmem:[#allocation6 + $0xa0] sm:$0xff]  ;;  %v309_v52 = vld [vmem:[#allocation6 + $0xb0] sm:$0xff]  ;;  %v322_v35 = vshrl.u32 %v321_v34, 7 }
  0x79   : > { %705 = vmatpush1.bf16.msra.mxu0 %v704_v20  ;;  %731 = vmatprep.subr.bf16.mxu1 %v730_v38  ;;  %v734_v47 = vpack.c.bf16 %v434_v44, %v433_v41  ;;  %v418_v49 = vld [vmem:[#allocation8 + $0x28] sm:$0xff]  ;;  %v314_v54 = vld [vmem:[#allocation6 + $0xd8] sm:$0xff]  ;;  %v716_v56 = vpack.c.bf16 %v309_v52, %v307_v51  ;;  %v311_v58 = vld [vmem:[#allocation6 + $0xc0] sm:$0xff] }
  0x7a   : > { %707 = vmatprep.subr.bf16.mxu0 %v706_v21  ;;  %v312_v53 = vld [vmem:[#allocation6 + $0xc8] sm:$0xff]  ;;  %v736_v55 = vpack.c.bf16 %v418_v49, %v417_v48  ;;  %v313_v59 = vld [vmem:[#allocation6 + $0xd0] sm:$0xff]  ;;  %v318_v61 = vld [vmem:[#allocation6 + $0xf8] sm:$0xff]  ;;  %v327_v38 = vsub.s32 1, %v322_v35 }
  0x7b   : > { %v718_v57 = vpack.c.bf16 %v314_v54, %v312_v53  ;;  %v316_v60 = vld [vmem:[#allocation6 + $0xe8] sm:$0xff]  ;;  %v720_v62 = vpack.c.bf16 %v313_v59, %v311_v58  ;;  %v315_v0 = vld [vmem:[#allocation6 + $0xe0] sm:$0xff]  ;;  %v317_v1 = vld [vmem:[#allocation6 + $0xf0] sm:$0xff] }
  0x7c   : > { %733 = vmatpush3.bf16.msra.mxu1 %v732_v45  ;;  %v722_v63 = vpack.c.bf16 %v318_v61, %v316_v60  ;;  %v724_v2 = vpack.c.bf16 %v317_v1, %v315_v0  ;;  %v286_v3 = vld [vmem:[%s1254_s7] sm:$0xff]  ;;  %v437_v10 = vld [vmem:[#allocation8 + $0xc0] sm:$0xff]  ;;  %v438_v11 = vld [vmem:[#allocation8 + $0xc8] sm:$0xff]  ;;  %s942_s7 = scalar_lea.vmem %s941_s16, 256 }
  0x7d   : > { %709 = vmatpush1.bf16.msra.mxu0 %v708_v31  ;;  %735 = vmatprep.subr.bf16.mxu1 %v734_v47  ;;  %v435_v4 = vld [vmem:[#allocation8 + $0xb0] sm:$0xff]  ;;  %v436_v5 = vld [vmem:[#allocation8 + $0xb8] sm:$0xff]  ;;  %v742_v12 = vpack.c.bf16 %v438_v11, %v437_v10  ;;  %v421_v13 = vld [vmem:[#allocation8 + $0x40] sm:$0xff]  ;;  %p944_p5 = scmp.lt.s32.totalorder %s942_s7, %s936_s24 }
  0x7e   : > { %711 = vmatprep.subr.bf16.mxu0 %v710_v36  ;;  %v738_v6 = vpack.c.bf16 %v436_v5, %v435_v4  ;;  %v419_v7 = vld [vmem:[#allocation8 + $0x30] sm:$0xff]  ;;  %v420_v8 = vld [vmem:[#allocation8 + $0x38] sm:$0xff]  ;;  %v422_v14 = vld [vmem:[#allocation8 + $0x48] sm:$0xff]  ;;  %v323_v36 = vsub.s32 0, %v322_v35 }
  0x7f   : > { %v740_v9 = vpack.c.bf16 %v420_v8, %v419_v7  ;;  %v744_v15 = vpack.c.bf16 %v422_v14, %v421_v13  ;;  %v439_v16 = vld [vmem:[#allocation8 + $0xd0] sm:$0xff]  ;;  %v440_v17 = vld [vmem:[#allocation8 + $0xd8] sm:$0xff]  ;;  %v441_v22 = vld [vmem:[#allocation8 + $0xe0] sm:$0xff]  ;;  %p945_p9 = por %p944_p5, %p943_p3 }
  0x80   : > { %737 = vmatpush3.bf16.msra.mxu1 %v736_v55  ;;  %v746_v18 = vpack.c.bf16 %v440_v17, %v439_v16  ;;  %v423_v19 = vld [vmem:[#allocation8 + $0x50] sm:$0xff]  ;;  %v424_v20 = vld [vmem:[#allocation8 + $0x58] sm:$0xff]  ;;  %v442_v23 = vld [vmem:[#allocation8 + $0xe8] sm:$0xff] }
  0x81   : > { %713 = vmatpush1.bf16.msra.mxu0 %v712_v46  ;;  %739 = vmatprep.subr.bf16.mxu1 %v738_v6  ;;  %v748_v21 = vpack.c.bf16 %v424_v20, %v423_v19  ;;  %v750_v24 = vpack.c.bf16 %v442_v23, %v441_v22  ;;  %v425_v25 = vld [vmem:[#allocation8 + $0x60] sm:$0xff]  ;;  %v426_v26 = vld [vmem:[#allocation8 + $0x68] sm:$0xff]  ;;  %v443_v28 = vld [vmem:[#allocation8 + $0xf0] sm:$0xff]  ;;  %p946_p11 = pnand %p945_p9, %p939_p10 }
  0x82   : > { %715 = vmatprep.subr.bf16.mxu0 %v714_v50  ;;  %v752_v27 = vpack.c.bf16 %v426_v26, %v425_v25  ;;  %v444_v29 = vld [vmem:[#allocation8 + $0xf8] sm:$0xff]  ;;  %v427_v31 = vld [vmem:[#allocation8 + $0x70] sm:$0xff] }
  0x83   : > { %v754_v30 = vpack.c.bf16 %v444_v29, %v443_v28  ;;  %v428_v32 = vld [vmem:[#allocation8 + $0x78] sm:$0xff]  ;;  %v319_v37 = vld [vmem:[%s1328_s2] sm:$0x3] }
  0x84   : > { %741 = vmatpush3.bf16.msra.mxu1 %v740_v9  ;;  %v756_v33 = vpack.c.bf16 %v428_v32, %v427_v31  ;;  %v324_v39 = vrot.slane %v319_v37, %v323_v36  ;;  %v328_v40 = vrot.slane %v319_v37, %v327_v38 }
  0x85   : > { %717 = vmatpush1.bf16.msra.mxu0 %v716_v56  ;;  %743 = vmatprep.subr.bf16.mxu1 %v742_v12 }
  0x86   : > { %719 = vmatprep.subr.bf16.mxu0 %v718_v57  ;;  %v654_v57 = vld [vmem:[%s1330_s4] ss:$0 sm:$0xff] }
  0x88   : > { %745 = vmatpush3.bf16.msra.mxu1 %v744_v15 }
  0x89   : > { %721 = vmatpush1.bf16.msra.mxu0 %v720_v62  ;;  %747 = vmatprep.subr.bf16.mxu1 %v746_v18 }
  0x8a   : > { %723 = vmatprep.subr.bf16.mxu0 %v722_v63 }
  0x8c   : > { %749 = vmatpush3.bf16.msra.mxu1 %v748_v21 }
  0x8d   : > { %725 = vmatpush1.bf16.msra.mxu0 %v724_v2  ;;  %751 = vmatprep.subr.bf16.mxu1 %v750_v24 }
  0x90   : > { %396 = vmatmul.mubr.f32.vlgmr.msra.gmra.mrb[0].mxu0 %v286_v3  ;;  %753 = vmatpush3.bf16.msra.mxu1 %v752_v27 }
  0x91   : > { %755 = vmatprep.subr.bf16.mxu1 %v754_v30 }
  0x94   : > { %757 = vmatpush3.bf16.msra.mxu1 %v756_v33 }
 0x163   : > { %v397_v41 = vpop.f32.mrb[0].mxu0 }
 0x164   : > { %v398_v42 = vadd.f32 %v397_v41, %v324_v39  ;;  %v399_v43 = vpop.f32.mrb[1].mxu0 }
 0x165   : > { %v400_v44 = vadd.f32 %v399_v43, %v328_v40 }
 0x166   : > { %v404_v45 = vmul.f32 0.70710677, %v398_v42  ;;  %v402_v52 = vmul.f32 0.5, %v398_v42 }
 0x167   : > { %v405_v46 = vmul.f32 0.70710677, %v400_v44  ;;  %v403_v50 = vmul.f32 0.5, %v400_v44 }
 0x168   : > { %846 = verf.f32 %v404_v45 }
 0x169   : > { %848 = verf.f32 %v405_v46 }
 0x172   : > { %v847_v47 = vpop.eup %846 }
 0x173   : > { %v849_v48 = vpop.eup %848  ;;  %v408_v49 = vadd.f32 1.0, %v847_v47 }
 0x174   : > { %v409_v51 = vadd.f32 1.0, %v849_v48 }
 0x175   : > { %v410_v54 = vmul.f32 %v408_v49, %v402_v52 }
 0x176   : > { %v411_v53 = vmul.f32 %v409_v51, %v403_v50 }
 0x178   : > { %509 = vmatprep.mubr.f32.mxu1 %v411_v53 }
 0x179   : > { %510 = vmatmul.mubr.f32.vlgmr.msra.gmra.mrb[0].mxu1 %v410_v54 }
 0x24c   : > { %v691_v55 = vpop.f32.mrb[0].mxu1 }
 0x24d   : > { %v692_v56 = vpop.f32.mrb[1].mxu1 }
 0x24e   : > { %v693_v58 = vadd.f32 %v692_v56, %v691_v55 }
 0x250   : > { %v528_v59 = vadd.f32 %v693_v58, %v654_v57 }
 0x252   : > { %529 = vst [vmem:[%s280_s9] sm:$0xff] %v528_v59 }
 0x253   : > { %949 = shalt.err (!%p946_p11)
}
 0x254   : > { %s950_s13 = scalar_lea.hbm %s1277_s8, 128  ;;  %s954_s30 = scalar_lea.hbm %s1331_s5, 256 }
 0x255   : > { %p951_p0 = scmp.ne.s32.totalorder %s1277_s8, %s950_s13  ;;  %p955_p6 = scmp.lt.u32.totalorder %s1277_s8, %s1331_s5 }
 0x256   : > { %p956_p7 = scmp.lt.u32.totalorder %s954_s30, %s950_s13  ;;  %p958_p8 = scmp.lt.u32.totalorder %s950_s13, %s1277_s8 }
 0x257   : > { %p952_p4 = pnand %p951_p0, %p1346_p12 }
 0x258   : > { %p957_p2 = por %p956_p7, %p955_p6 }
 0x259   : > { %p953_p13 = pneg %p952_p4 }
 0x25a   : > { %p959_p1 = por %p958_p8, %p957_p2 }
 0x25c   : > { %p960_p10 = pnand %p959_p1, %p953_p13 }
 0x25e   : > { %963 = shalt.err (!%p960_p10)
}
 0x25f   : > { %768 = dma.vmem_to_hbm [thread:$0]  (%p1346_p12), %s1279_s11, 128, %s1277_s8, %s531_s10  }
 0x260 PF: > { %s556_s9 = sand.u32 1, %s1002_s18   ;;  %p1347_p3 = scmp.ne.s32.totalorder %s1339_s29, 0 }
 0x261   : > { %p1348_p5 = scmp.ge.s32.totalorder %s1022_s23, 2  ;;  %s557_s15 = scalar_lea.sflag [#allocation5], %s556_s9 }
 0x263   : > { %p782_p9 = pnand %p1348_p5, %p1347_p3 }
 0x265   : > { %997 = dma.done.wait (!%p782_p9), %s557_s15, 128  }
 0x266   : > { %999 = vsyncadd (!%p782_p9), %s557_s15, 4294967168  ;;  %s22_s23 = sadd.s32 1, %s1022_s23   ;;  %s1349_s18 = smov %s1006_s19 }
 0x267   : > { %p19_p11 = scmp.ge.s32.totalorder %s22_s23, 4   ;;  %s1350_s19 = smov %s1010_s20 }
 0x268   : > { %s1351_s20 = smov %s1205_s17  ;;  %s1352_s21 = smov %s1018_s22 }
 0x269   : > { %s1353_s22 = smov %s1355_s12  ;;  %21 = sbr.rel (!%p19_p11) target bundleno = 7 (0x7), region = 101 }
 0x270   :  { %562 = vsyncpa [#allocation4], 1 }
 0x271   :  { %564 = vsyncpa [#allocation4 + $0x1], 1 }
 0x272   :  { %565 = vsyncpa [#allocation7], 1 }
 0x273   :  { %566 = vsyncpa [#allocation5], 1 }
 0x274   :  { %568 = vsyncpa [#allocation5 + $0x1], 1 }

</bundles_post_ra>
